<compile_context>
chip_gen: v5e
topology: v5e:2x2
jax: 0.10.0
libtpu: 0.0.40
codegen_flags: <defaults>
</compile_context>

<pallas_src>
import functools

import jax
import jax.numpy as jnp
from jax.experimental import pallas as pl
from jax.experimental.pallas import tpu as pltpu


def _mlp_kernel(xT_ref, w1_ref, b1_ref, w2_ref, b2_ref, o_ref):
    # xT_ref: (F, TILE_N)   w1_ref: (H, F)   b1_ref / w2_ref: (H, 1)
    # b2_ref: (1, 1) in SMEM   o_ref: (1, TILE_N)
    h = jnp.dot(w1_ref[...], xT_ref[...],
                preferred_element_type=jnp.float32)           # MXU: (H, TILE_N)
    h = jnp.maximum(h + b1_ref[...], 0.0)                     # bias + ReLU (VPU)
    # Second linear layer as VPU multiply + sublane (XLU) reduce instead of a
    # degenerate K=8, N=1 MXU matmul.
    y = jnp.sum(h * w2_ref[...], axis=0, keepdims=True)       # (1, TILE_N)
    o_ref[...] = jax.nn.sigmoid(y + b2_ref[0, 0])             # EUP + VPU


def _round_up(x, m):
    return (x + m - 1) // m * m


@functools.partial(jax.jit, static_argnames=("tile_n",))
def binary_logreg_hidden_forward(x, w1, b1, w2, b2, *, tile_n=512):
    """Forward pass of BinaryLogReg_model_withHiddenLayer.

    Args (PyTorch-native parameter layouts):
      x : (N, F) input batch.
      w1: (H, F) layer1 weight,  b1: (H,) layer1 bias.
      w2: (1, H) layer2 weight,  b2: (1,) layer2 bias.
    Returns:
      (N, 1) sigmoid probabilities, float32.
    """
    N, F = x.shape
    H = w1.shape[0]

    x = x.astype(jnp.float32)
    w1 = w1.astype(jnp.float32)
    b1_col = b1.astype(jnp.float32).reshape(H, 1)
    w2_col = w2.astype(jnp.float32).reshape(H, 1)
    b2_s = b2.astype(jnp.float32).reshape(1, 1)

    # Batch goes on the 128-lane axis: pad N up to a multiple of the tile and
    # transpose (layout plumbing, kept outside the kernel).
    tile_n = min(tile_n, _round_up(N, 128))
    n_pad = _round_up(N, tile_n)
    xT = jnp.pad(x, ((0, n_pad - N), (0, 0))).T               # (F, n_pad)

    grid = (n_pad // tile_n,)

    out = pl.pallas_call(
        _mlp_kernel,
        out_shape=jax.ShapeDtypeStruct((1, n_pad), jnp.float32),
        grid=grid,
        in_specs=[
            pl.BlockSpec((F, tile_n), lambda i: (0, i)),        # streamed x tiles
            pl.BlockSpec((H, F), lambda i: (0, 0)),             # resident W1
            pl.BlockSpec((H, 1), lambda i: (0, 0)),             # resident b1
            pl.BlockSpec((H, 1), lambda i: (0, 0)),             # resident w2
            pl.BlockSpec(memory_space=pltpu.MemorySpace.SMEM),  # scalar b2
        ],
        out_specs=pl.BlockSpec((1, tile_n), lambda i: (0, i)),  # lane-dense out
        compiler_params=pltpu.CompilerParams(
            dimension_semantics=("parallel",)),
    )(xT, w1, b1_col, w2_col, b2_s)

    return out[0, :N].reshape(N, 1)


if __name__ == "__main__":
    key = jax.random.PRNGKey(0)

    def init_params(k, F, H):
        # Deterministic init mimicking torch.nn.Linear uniform(-1/sqrt(fan_in), +).
        kw1, kb1, kw2, kb2 = jax.random.split(k, 4)
        lim1 = 1.0 / jnp.sqrt(jnp.float32(F))
        w1 = jax.random.uniform(kw1, (H, F), jnp.float32, -lim1, lim1)
        b1 = jax.random.uniform(kb1, (H,), jnp.float32, -lim1, lim1)
        lim2 = 1.0 / jnp.sqrt(jnp.float32(H))
        w2 = jax.random.uniform(kw2, (1, H), jnp.float32, -lim2, lim2)
        b2 = jax.random.uniform(kb2, (1,), jnp.float32, -lim2, lim2)
        return w1, b1, w2, b2

    def reference(x, w1, b1, w2, b2):
        h = jnp.maximum(x @ w1.T + b1, 0.0)
        return jax.nn.sigmoid(h @ w2.T + b2)

    H = 8

    # Case 1: small shapes consistent with the module (batch=8, features=16, hidden=8).
    k1, k2, kp1, kp2 = jax.random.split(key, 4)
    N1, F1 = 8, 16
    x1 = jax.random.normal(k1, (N1, F1), dtype=jnp.float32)
    p1 = init_params(kp1, F1, H)
    out1 = jax.block_until_ready(binary_logreg_hidden_forward(x1, *p1))
    ref1 = reference(x1, *p1)
    assert out1.shape == (N1, 1)
    assert jnp.allclose(out1, ref1, atol=1e-5, rtol=1e-5)

    # Case 2: multi-tile pipelined grid with batch padding (N not a tile multiple).
    N2, F2 = 700, 32
    x2 = jax.random.normal(k2, (N2, F2), dtype=jnp.float32)
    p2 = init_params(kp2, F2, H)
    out2 = jax.block_until_ready(
        binary_logreg_hidden_forward(x2, *p2, tile_n=256))
    ref2 = reference(x2, *p2)
    assert out2.shape == (N2, 1)
    assert jnp.allclose(out2, ref2, atol=1e-5, rtol=1e-5)

    print("KERNEL_OK")
</pallas_src>

<mosaic_0001>
module attributes {stable_mosaic.version = 11 : i64} {
  func.func @_mlp_kernel(%arg0: i32, %arg1: memref<16x128xf32, #tpu.memory_space<vmem>>, %arg2: memref<8x16xf32, #tpu.memory_space<vmem>>, %arg3: memref<8x1xf32, #tpu.memory_space<vmem>>, %arg4: memref<8x1xf32, #tpu.memory_space<vmem>>, %arg5: memref<1x1xf32, #tpu.memory_space<smem>>, %arg6: memref<1x128xf32, #tpu.memory_space<vmem>>) attributes {dimension_semantics = [#tpu.dimension_semantics<parallel>], iteration_bounds = array<i64: 1>, scalar_prefetch = 0 : i64, scratch_operands = 0 : i64, tpu.core_type = #tpu.core_type<tc>, window_params = [{transform_indices = @transform_0, window_bounds = array<i64: 16, 128>}, {pipeline_mode = #tpu.pipeline_mode<synchronous>, transform_indices = @transform_1, window_bounds = array<i64: 8, 16>}, {pipeline_mode = #tpu.pipeline_mode<synchronous>, transform_indices = @transform_2, window_bounds = array<i64: 8, 1>}, {pipeline_mode = #tpu.pipeline_mode<synchronous>, transform_indices = @transform_3, window_bounds = array<i64: 8, 1>}, {transform_indices = @transform_4, window_bounds = array<i64: 1, 1>}, {transform_indices = @transform_5, window_bounds = array<i64: 1, 128>}]} {
    %c0 = arith.constant 0 : index
    %c0_0 = arith.constant 0 : index
    %0 = vector.load %arg2[%c0, %c0_0] : memref<8x16xf32, #tpu.memory_space<vmem>>, vector<8x16xf32>
    %c0_1 = arith.constant 0 : index
    %c0_2 = arith.constant 0 : index
    %1 = vector.load %arg1[%c0_1, %c0_2] : memref<16x128xf32, #tpu.memory_space<vmem>>, vector<16x128xf32>
    %cst = arith.constant dense<0.000000e+00> : vector<8x128xf32>
    %2 = tpu.matmul %0, %1, %cst {dimension_numbers = #tpu.dot_dimension_numbers<[1], [0], [0], [1], [0, 0, 1, 1], [], []>} : vector<8x16xf32>, vector<16x128xf32>, vector<8x128xf32> -> vector<8x128xf32>
    %c0_3 = arith.constant 0 : index
    %c0_4 = arith.constant 0 : index
    %3 = vector.load %arg3[%c0_3, %c0_4] : memref<8x1xf32, #tpu.memory_space<vmem>>, vector<8x1xf32>
    %4 = vector.broadcast %3 : vector<8x1xf32> to vector<8x128xf32>
    %5 = arith.addf %2, %4 : vector<8x128xf32>
    %cst_5 = arith.constant 0.000000e+00 : f32
    %6 = vector.broadcast %cst_5 : f32 to vector<8x128xf32>
    %7 = arith.maximumf %5, %6 : vector<8x128xf32>
    %c0_6 = arith.constant 0 : index
    %c0_7 = arith.constant 0 : index
    %8 = vector.load %arg4[%c0_6, %c0_7] : memref<8x1xf32, #tpu.memory_space<vmem>>, vector<8x1xf32>
    %9 = vector.broadcast %8 : vector<8x1xf32> to vector<8x128xf32>
    %10 = arith.mulf %7, %9 : vector<8x128xf32>
    %cst_8 = arith.constant dense<0.000000e+00> : vector<128xf32>
    %11 = vector.multi_reduction <add>, %10, %cst_8 [0] : vector<8x128xf32> to vector<128xf32>
    %12 = vector.shape_cast %11 : vector<128xf32> to vector<1x128xf32>
    %c0_9 = arith.constant 0 : index
    %c0_10 = arith.constant 0 : index
    %13 = memref.load %arg5[%c0_9, %c0_10] : memref<1x1xf32, #tpu.memory_space<smem>>
    %14 = vector.broadcast %13 : f32 to vector<1x128xf32>
    %15 = arith.addf %12, %14 : vector<1x128xf32>
    %16 = arith.negf %15 : vector<1x128xf32>
    %17 = math.exp %16 : vector<1x128xf32>
    %cst_11 = arith.constant 1.000000e+00 : f32
    %18 = vector.broadcast %cst_11 : f32 to vector<1x128xf32>
    %19 = arith.addf %18, %17 : vector<1x128xf32>
    %20 = arith.divf %18, %19 : vector<1x128xf32>
    %c0_12 = arith.constant 0 : index
    %c0_13 = arith.constant 0 : index
    %21 = vector.load %arg6[%c0_12, %c0_13] : memref<1x128xf32, #tpu.memory_space<vmem>>, vector<1x128xf32>
    tpu.vector_store %arg6[%c0_12, %c0_13], %20 {strides = array<i32>} : memref<1x128xf32, #tpu.memory_space<vmem>>, vector<1x128xf32>,
    return
  }
  func.func @transform_0(%arg0: i32) -> (i32, i32) {
    %c0_i32 = arith.constant 0 : i32
    %c0_i32_0 = arith.constant 0 : i32
    return %c0_i32, %arg0 : i32, i32
  }
  func.func @transform_1(%arg0: i32) -> (i32, i32) {
    %c0_i32 = arith.constant 0 : i32
    %c0_i32_0 = arith.constant 0 : i32
    %c0_i32_1 = arith.constant 0 : i32
    return %c0_i32, %c0_i32_0 : i32, i32
  }
  func.func @transform_2(%arg0: i32) -> (i32, i32) {
    %c0_i32 = arith.constant 0 : i32
    %c0_i32_0 = arith.constant 0 : i32
    %c0_i32_1 = arith.constant 0 : i32
    return %c0_i32, %c0_i32_0 : i32, i32
  }
  func.func @transform_3(%arg0: i32) -> (i32, i32) {
    %c0_i32 = arith.constant 0 : i32
    %c0_i32_0 = arith.constant 0 : i32
    %c0_i32_1 = arith.constant 0 : i32
    return %c0_i32, %c0_i32_0 : i32, i32
  }
  func.func @transform_4(%arg0: i32) -> (i32, i32) {
    %c0_i32 = arith.constant 0 : i32
    %c0_i32_0 = arith.constant 0 : i32
    %c0_i32_1 = arith.constant 0 : i32
    return %c0_i32, %c0_i32_0 : i32, i32
  }
  func.func @transform_5(%arg0: i32) -> (i32, i32) {
    %c0_i32 = arith.constant 0 : i32
    %c0_i32_0 = arith.constant 0 : i32
    return %c0_i32, %arg0 : i32, i32
  }
}

</mosaic_0001>

<bundles_post_ra>
// kernel: binary_logreg_hidden_forward.1
= control target key start
LH: loop header
LB: loop body
LE: loop exit
PB: predicated region body
PF: predicated region fallthrough
CT: control target
= control target key end

     0   :  { %v103_v1 = vmov 0   ;;  %vm30_vm0 = vcmask 130048   ;;  %s155_s0 = inlined_call_operand.vmem [shape: f32[16,128], index: 0, kind: input, shape index: {}]   ;;  %s156_s2 = inlined_call_operand.vmem [shape: f32[8,1], index: 2, kind: input, shape index: {}]   ;;  %s157_s1 = inlined_call_operand.vmem [shape: f32[8,16], index: 1, kind: input, shape index: {}]   ;;  %s158_s3 = inlined_call_operand.vmem [shape: f32[8,1], index: 3, kind: input, shape index: {}]   ;;  %s159_s4 = inlined_call_operand.<no memory space> [shape: f32[1,1], index: 4, kind: input, shape index: {}]   ;;  %s160_s5 = inlined_call_operand.vmem [shape: f32[1,128], index: 5, kind: output, shape index: {}]  }
   0x1   :  { %v23_v0 = vld [vmem:[%s155_s0 + $0x8] sm:$0xff]  ;;  %98 = vset.pattern.permute.xlu0 %v103_v1  ;;  %v24_v2 = vld [vmem:[%s156_s2] sm:$0xff]  ;;  %v69_v17 = vstv %s159_s4 }
   0x2   :  { %v22_v3 = vld [vmem:[%s155_s0] sm:$0xff]  ;;  %48 = vmatpush.msra.mxu0 %v23_v0  ;;  %27 = vperm.xlu0 %98, %v24_v2  }
   0x3   :  { %v21_v4 = vld [vmem:[%s157_s1] sm:$0xff] }
   0x4   :  { %49 = vmatpush.msra.mxu0 %v22_v3  ;;  %v55_v5 = vld [vmem:[%s158_s3] sm:$0xff] }
   0x5   :  { %95 = vmatmul.msk.f32.vlgmr.msra.gmra.mxu0 %vm30_vm0, %v21_v4 }
   0xa   :  { %58 = vperm.xlu0 %98, %v55_v5  }
  0x74   :  { %v28_v6 = vpop.permute.xlu0 %27 }
  0x7c   :  { %v59_v10 = vpop.permute.xlu0 %58 }
  0x82   :  { %v51_v7 = vpop.f32.mrf.mxu0 }
  0x83   :  { %v52_v8 = vadd.f32 %v51_v7, %v28_v6 }
  0x85   :  { %v54_v9 = vmax.f32 %v52_v8, 0.0 }
  0x87   :  { %v61_v11 = vmul.f32 %v59_v10, %v54_v9 }
  0x89   :  { %v62_v12 = vrot.slane %v61_v11, 4 }
  0x8b   :  { %v63_v13 = vadd.f32 %v62_v12, %v61_v11 }
  0x8d   :  { %v64_v14 = vrot.slane %v63_v13, 2 }
  0x8f   :  { %v65_v15 = vadd.f32 %v64_v14, %v63_v13 }
  0x91   :  { %v66_v16 = vrot.slane %v65_v15, 1 }
  0x93   :  { %v67_v18 = vadd.f32 %v66_v16, %v65_v15 }
  0x95   :  { %v70_v19 = vadd.f32 %v69_v17, %v67_v18 }
  0x97   :  { %v96_v20 = vmul.f32 -1.442695, %v70_v19 }
  0x99   :  { %99 = vpow2.f32 %v96_v20 }
  0x9f   :  { %v100_v21 = vpop.eup %99 }
  0xa0   :  { %v74_v22 = vadd.f32 1.0, %v100_v21 }
  0xa2   :  { %101 = vrcp.f32 %v74_v22  ;;  %v86_v26 = vand.u32 2147483648, %v74_v22  ;;  %v84_v28 = vand.u32 2147483647, %v74_v22  ;;  %vm80_vm2 = vweird.f32 %v74_v22 }
  0xa4   :  { %v87_v30 = vor.u32 1.1754944e-38, %v86_v26  ;;  %vm85_vm4 = vcmp.eq.f32.partialorder %v84_v28, 8.507059e+37 }
  0xa8   :  { %v102_v23 = vpop.eup %101 }
  0xa9   :  { %v76_v24 = vmul.f32 %v102_v23, %v74_v22  ;;  %vm81_vm1 = vweird.f32 %v102_v23 }
  0xaa   :  { %vm82_vm3 = vmor %vm80_vm2, %vm81_vm1 }
  0xab   :  { %v77_v25 = vsub.f32 1.0, %v76_v24 }
  0xad   :  { %v78_v27 = vmul.f32 %v102_v23, %v77_v25 }
  0xaf   :  { %v79_v29 = vadd.f32 %v102_v23, %v78_v27 }
  0xb1   :  { %v83_v31 = vsel %vm82_vm3, %v102_v23, %v79_v29 }
  0xb2   :  { %v88_v32 = vsel %vm85_vm4, %v87_v30, %v83_v31 }
  0xb3   :  { %90 = vst [vmem:[%s160_s5] sm:$0x1] %v88_v32 }

</bundles_post_ra>
